<compile_context>
chip_gen: v5e
topology: v5e:2x2
jax: 0.10.0
libtpu: 0.0.40
codegen_flags: <defaults>
</compile_context>

<pallas_src>
import functools

import jax
import jax.numpy as jnp
from jax import lax
from jax.experimental import pallas as pl
from jax.experimental.pallas import tpu as pltpu


def _downsample_kernel(x_ref, s_ref, w1_ref, b1_ref, w2_ref, b2_ref, o_ref,
                       im1_ref, im2_ref, *, NB, Cin, Cout, W, Hp, Wp, A):
    """One grid step = NB images, channels on sublanes, flattened spatial on lanes."""
    HW = x_ref.shape[-1]
    HpWp = Hp * Wp
    L = NB * HpWp                       # lanes of valid conv output per step
    HWv = HW - W - 1                    # length of the shifted pooling slabs
    offs = [dy * Wp + dx for dy in range(3) for dx in range(3)]   # 3x3 tap lane offsets

    # One-time scratch init.  Stale lanes in the staggered tap windows only ever feed
    # cropped output rows/cols (tap offset <= 2*Wp+2 => only the last image's rows >= Hp-3
    # / cols >= Wp-2 can see them, all of which the wrapper crops), but zero them once so
    # no NaN ever enters the MXU.
    @pl.when(pl.program_id(0) == 0)
    def _init():
        im1_ref[...] = jnp.zeros_like(im1_ref)
        im2_ref[...] = jnp.zeros_like(im2_ref)

    # ---- MaxPool2d(2), fully in-kernel --------------------------------------------------
    # dense[c, f] = max over the 2x2 window anchored at flat index f; pooled values live at
    # f = 2i*W + 2j and are compacted to (Cin, Hp*Wp) with one 0/1 selection matmul.
    s_mat = s_ref[...]                                          # (HWv, HpWp) bf16, 0/1
    for b in range(NB):
        a00 = x_ref[b, :, pl.ds(0, HWv)]
        a01 = x_ref[b, :, pl.ds(1, HWv)]
        a10 = x_ref[b, :, pl.ds(W, HWv)]
        a11 = x_ref[b, :, pl.ds(W + 1, HWv)]
        dense = jnp.maximum(jnp.maximum(a00, a01), jnp.maximum(a10, a11))   # f32 max
        pooled = jnp.dot(dense.astype(jnp.bfloat16), s_mat,
                         preferred_element_type=jnp.float32)    # (Cin, HpWp), exact select
        im1_ref[0:Cin, pl.ds(A + b * HpWp, HpWp)] = pooled      # tap-0 row block

    # Replicate the pooled plane into the remaining 8 tap row-blocks at staggered lane
    # offsets: rows [t*Cin:(t+1)*Cin], lanes [A, A+L) then hold tap t's shifted slab.
    pool_all = im1_ref[0:Cin, pl.ds(A, L)]                      # (Cin, L) f32
    for t in range(1, 9):
        im1_ref[t * Cin:(t + 1) * Cin, pl.ds(A - offs[t], L)] = pool_all

    # ---- Conv1 3x3 VALID (+ folded BN) + ReLU: ONE (Cout,9Cin) x (9Cin,L) matmul --------
    im1 = im1_ref[:, pl.ds(A, L)].astype(jnp.bfloat16)          # lane-aligned load
    y1 = jnp.dot(w1_ref[...], im1, preferred_element_type=jnp.float32)
    h1 = jnp.maximum(y1 + b1_ref[...], 0.0)                     # (Cout, L) f32, bias once

    # Stage h1 into the second im2col scratch (9 staggered copies, row blocks of Cout).
    for t in range(9):
        im2_ref[t * Cout:(t + 1) * Cout, pl.ds(A - offs[t], L)] = h1

    # ---- Conv2 3x3 VALID (+ folded BN) + ReLU: ONE (Cout,9Cout) x (9Cout,L) matmul ------
    im2 = im2_ref[:, pl.ds(A, L)].astype(jnp.bfloat16)
    y2 = jnp.dot(w2_ref[...], im2, preferred_element_type=jnp.float32)
    o_ref[0] = jnp.maximum(y2 + b2_ref[...], 0.0).astype(o_ref.dtype)


def downsample_pallas(x_nchw, w1_stacked, b1, w2_stacked, b2):
    """x_nchw: (N, Cin, H, W) f32; w*_stacked: (Cout, 9*C) BN-folded, (dy,dx,c)-ordered."""
    N, Cin, H, W = x_nchw.shape
    Cout = w1_stacked.shape[0]
    assert H % 2 == 0 and W % 2 == 0, "MaxPool2d(2) path assumes even H, W"
    Hp, Wp = H // 2, W // 2
    assert Hp >= 5 and Wp >= 5, "need positive output size after two VALID 3x3 convs"
    H1, W1 = Hp - 2, Wp - 2
    H2, W2 = H1 - 2, W1 - 2
    HW, HpWp = H * W, Hp * Wp
    HWv = HW - W - 1

    # Images per grid step: make the output block's last dim >= 256 lanes when possible.
    NB = min(N, max(1, -(-256 // HpWp)))
    while N % NB:
        NB -= 1
    G = N // NB
    L = NB * HpWp
    A = -(-(2 * Wp + 2) // 128) * 128          # lane-aligned start of the im2col window
    Lpad = A + L                               # scratch lane width

    # 0/1 stride-2 selection matrix: column m = i*Wp + j picks dense flat index 2i*W + 2j.
    ii, jj = jnp.meshgrid(jnp.arange(Hp), jnp.arange(Wp), indexing="ij")
    rows = (2 * ii * W + 2 * jj).reshape(-1)
    s_mat = (jnp.zeros((HWv, HpWp), jnp.float32)
             .at[rows, jnp.arange(HpWp)].set(1.0).astype(jnp.bfloat16))

    xs = x_nchw.astype(jnp.float32).reshape(N, Cin, HW)   # free reshape, no HBM copy

    kernel = functools.partial(_downsample_kernel, NB=NB, Cin=Cin, Cout=Cout,
                               W=W, Hp=Hp, Wp=Wp, A=A)

    flops = int(2 * N * HpWp * (Cin * HWv + 9 * Cin * Cout + 9 * Cout * Cout))
    bytes_accessed = int(4 * (xs.size + N * Cout * HpWp)
                         + 2 * (w1_stacked.size + w2_stacked.size + s_mat.size)
                         + 4 * 2 * Cout)

    out_flat = pl.pallas_call(
        kernel,
        out_shape=jax.ShapeDtypeStruct((G, Cout, L), jnp.float32),
        grid_spec=pltpu.PrefetchScalarGridSpec(
            num_scalar_prefetch=0,
            grid=(G,),
            in_specs=[
                pl.BlockSpec((NB, Cin, HW), lambda g: (g, 0, 0)),      # raw input images
                pl.BlockSpec((HWv, HpWp), lambda g: (0, 0)),           # pool selection matrix
                pl.BlockSpec((Cout, 9 * Cin), lambda g: (0, 0)),       # conv1 weights (bf16)
                pl.BlockSpec((Cout, 1), lambda g: (0, 0)),             # conv1 bias (BN-folded)
                pl.BlockSpec((Cout, 9 * Cout), lambda g: (0, 0)),      # conv2 weights (bf16)
                pl.BlockSpec((Cout, 1), lambda g: (0, 0)),             # conv2 bias (BN-folded)
            ],
            out_specs=pl.BlockSpec((1, Cout, L), lambda g: (g, 0, 0)),
            scratch_shapes=[
                pltpu.VMEM((9 * Cin, Lpad), jnp.float32),   # stacked-K im2col for conv1
                pltpu.VMEM((9 * Cout, Lpad), jnp.float32),  # stacked-K im2col for conv2
            ],
        ),
        compiler_params=pltpu.CompilerParams(dimension_semantics=("parallel",)),
        cost_estimate=pl.CostEstimate(flops=flops, transcendentals=0,
                                      bytes_accessed=bytes_accessed),
    )(xs, s_mat,
      w1_stacked.astype(jnp.bfloat16), b1.reshape(Cout, 1).astype(jnp.float32),
      w2_stacked.astype(jnp.bfloat16), b2.reshape(Cout, 1).astype(jnp.float32))

    # Per-image stride inside the step is Hp*Wp; crop the garbage rows/cols -> NCHW.
    out = out_flat.reshape(G, Cout, NB, Hp, Wp)
    out = jnp.transpose(out, (0, 2, 1, 3, 4)).reshape(N, Cout, Hp, Wp)
    return out[:, :, :H2, :W2]


# --------------------------- reference (plain JAX) ---------------------------
def _bn_eval(x, gamma, beta, mean, var, eps=1e-5):
    inv = gamma / jnp.sqrt(var + eps)
    return x * inv[None, :, None, None] + (beta - mean * inv)[None, :, None, None]


def downsample_ref(x_nchw, w1_oihw, bn1, w2_oihw, bn2):
    xp = lax.reduce_window(x_nchw, -jnp.inf, lax.max,
                           (1, 1, 2, 2), (1, 1, 2, 2), 'VALID')
    y = lax.conv_general_dilated(xp, w1_oihw, (1, 1), 'VALID',
                                 dimension_numbers=('NCHW', 'OIHW', 'NCHW'))
    y = jax.nn.relu(_bn_eval(y, *bn1))
    y = lax.conv_general_dilated(y, w2_oihw, (1, 1), 'VALID',
                                 dimension_numbers=('NCHW', 'OIHW', 'NCHW'))
    y = jax.nn.relu(_bn_eval(y, *bn2))
    return y


# ------------------------------ parameter setup ------------------------------
def make_params(key, inp, out):
    ks = jax.random.split(key, 10)
    eps = 1e-5
    w1 = jax.random.normal(ks[0], (out, inp, 3, 3), jnp.float32) * 0.2   # OIHW, bias=False
    w2 = jax.random.normal(ks[1], (out, out, 3, 3), jnp.float32) * 0.2
    # Eval-mode BatchNorm parameters / running stats, deterministic & non-trivial.
    g1 = 0.5 + jax.random.uniform(ks[2], (out,), jnp.float32)
    b1 = jax.random.normal(ks[3], (out,), jnp.float32) * 0.1
    m1 = jax.random.normal(ks[4], (out,), jnp.float32) * 0.1
    v1 = 0.5 + jax.random.uniform(ks[5], (out,), jnp.float32)
    g2 = 0.5 + jax.random.uniform(ks[6], (out,), jnp.float32)
    b2 = jax.random.normal(ks[7], (out,), jnp.float32) * 0.1
    m2 = jax.random.normal(ks[8], (out,), jnp.float32) * 0.1
    v2 = 0.5 + jax.random.uniform(ks[9], (out,), jnp.float32)

    # Fold BN (eval) into the convs: w' = w * gamma/sqrt(var+eps), b' = beta - mean*scale.
    s1 = g1 / jnp.sqrt(v1 + eps)
    s2 = g2 / jnp.sqrt(v2 + eps)
    w1_f = w1 * s1[:, None, None, None]
    w2_f = w2 * s2[:, None, None, None]
    bias1 = b1 - m1 * s1
    bias2 = b2 - m2 * s2

    # (Cout, 9*C): columns ordered (dy, dx, c) to match the kernel's im2col row stacking.
    w1_stacked = jnp.transpose(w1_f, (0, 2, 3, 1)).reshape(out, 9 * inp)
    w2_stacked = jnp.transpose(w2_f, (0, 2, 3, 1)).reshape(out, 9 * out)
    return (w1, (g1, b1, m1, v1), w2, (g2, b2, m2, v2),
            w1_stacked, bias1, w2_stacked, bias2)


if __name__ == "__main__":
    key = jax.random.PRNGKey(0)
    kx, kp = jax.random.split(key)

    N, Cin, H, W = 8, 4, 16, 16   # batch of 8 so one grid step packs NB=4 images (256 lanes)
    Cout = 8
    x = jax.random.normal(kx, (N, Cin, H, W), jnp.float32)

    (w1_oihw, bn1, w2_oihw, bn2,
     w1s, bias1, w2s, bias2) = make_params(kp, Cin, Cout)

    out = downsample_pallas(x, w1s, bias1, w2s, bias2)
    out = jax.block_until_ready(out)

    ref = downsample_ref(x, w1_oihw, bn1, w2_oihw, bn2)
    assert out.shape == ref.shape == (N, Cout, H // 2 - 4, W // 2 - 4), (out.shape, ref.shape)
    # bf16 MXU operands (f32 accumulation) -> looser tolerance than a pure-f32 path.
    err = float(jnp.max(jnp.abs(out - ref)))
    assert jnp.allclose(out, ref, rtol=5e-2, atol=5e-2), err

    print("KERNEL_OK")
</pallas_src>

<mosaic_0001>
module attributes {stable_mosaic.version = 11 : i64} {
  func.func @_downsample_kernel(%arg0: i32, %arg1: memref<4x4x256xf32, #tpu.memory_space<vmem>>, %arg2: memref<239x64xbf16, #tpu.memory_space<vmem>>, %arg3: memref<8x36xbf16, #tpu.memory_space<vmem>>, %arg4: memref<8x1xf32, #tpu.memory_space<vmem>>, %arg5: memref<8x72xbf16, #tpu.memory_space<vmem>>, %arg6: memref<8x1xf32, #tpu.memory_space<vmem>>, %arg7: memref<1x8x256xf32, #tpu.memory_space<vmem>>, %arg8: memref<36x384xf32, #tpu.memory_space<vmem>>, %arg9: memref<72x384xf32, #tpu.memory_space<vmem>>) attributes {dimension_semantics = [#tpu.dimension_semantics<parallel>], iteration_bounds = array<i64: 2>, scalar_prefetch = 0 : i64, scratch_operands = 2 : i64, tpu.core_type = #tpu.core_type<tc>, window_params = [{transform_indices = @transform_0, window_bounds = array<i64: 4, 4, 256>}, {pipeline_mode = #tpu.pipeline_mode<synchronous>, transform_indices = @transform_1, window_bounds = array<i64: 239, 64>}, {pipeline_mode = #tpu.pipeline_mode<synchronous>, transform_indices = @transform_2, window_bounds = array<i64: 8, 36>}, {pipeline_mode = #tpu.pipeline_mode<synchronous>, transform_indices = @transform_3, window_bounds = array<i64: 8, 1>}, {pipeline_mode = #tpu.pipeline_mode<synchronous>, transform_indices = @transform_4, window_bounds = array<i64: 8, 72>}, {pipeline_mode = #tpu.pipeline_mode<synchronous>, transform_indices = @transform_5, window_bounds = array<i64: 8, 1>}, {transform_indices = @transform_6, window_bounds = array<i64: 1, 8, 256>}]} {
    %c0_i32 = arith.constant 0 : i32
    %0 = arith.cmpi eq, %arg0, %c0_i32 : i32
    %1 = arith.extui %0 : i1 to i32
    %c0_i32_0 = arith.constant 0 : i32
    %2 = arith.cmpi ne, %1, %c0_i32_0 : i32
    scf.if %2 {
      %cst_88 = arith.constant 0.000000e+00 : f32
      %99 = vector.broadcast %cst_88 : f32 to vector<36x384xf32>
      %c0_89 = arith.constant 0 : index
      %c0_90 = arith.constant 0 : index
      %100 = vector.load %arg8[%c0_89, %c0_90] : memref<36x384xf32, #tpu.memory_space<vmem>>, vector<36x384xf32>
      tpu.vector_store %arg8[%c0_89, %c0_90], %99 {strides = array<i32>} : memref<36x384xf32, #tpu.memory_space<vmem>>, vector<36x384xf32>,
      %cst_91 = arith.constant 0.000000e+00 : f32
      %101 = vector.broadcast %cst_91 : f32 to vector<72x384xf32>
      %c0_92 = arith.constant 0 : index
      %c0_93 = arith.constant 0 : index
      %102 = vector.load %arg9[%c0_92, %c0_93] : memref<72x384xf32, #tpu.memory_space<vmem>>, vector<72x384xf32>
      tpu.vector_store %arg9[%c0_92, %c0_93], %101 {strides = array<i32>} : memref<72x384xf32, #tpu.memory_space<vmem>>, vector<72x384xf32>,
    } else {
    }
    %c0 = arith.constant 0 : index
    %c0_1 = arith.constant 0 : index
    %3 = vector.load %arg2[%c0, %c0_1] : memref<239x64xbf16, #tpu.memory_space<vmem>>, vector<239x64xbf16>
    %c0_2 = arith.constant 0 : index
    %c0_3 = arith.constant 0 : index
    %c0_4 = arith.constant 0 : index
    %4 = vector.load %arg1[%c0_2, %c0_3, %c0_4] : memref<4x4x256xf32, #tpu.memory_space<vmem>>, vector<1x4x239xf32>
    %5 = vector.shape_cast %4 : vector<1x4x239xf32> to vector<4x239xf32>
    %c0_5 = arith.constant 0 : index
    %c0_6 = arith.constant 0 : index
    %c1 = arith.constant 1 : index
    %6 = vector.load %arg1[%c0_5, %c0_6, %c1] : memref<4x4x256xf32, #tpu.memory_space<vmem>>, vector<1x4x239xf32>
    %7 = vector.shape_cast %6 : vector<1x4x239xf32> to vector<4x239xf32>
    %c0_7 = arith.constant 0 : index
    %c0_8 = arith.constant 0 : index
    %c16 = arith.constant 16 : index
    %8 = vector.load %arg1[%c0_7, %c0_8, %c16] : memref<4x4x256xf32, #tpu.memory_space<vmem>>, vector<1x4x239xf32>
    %9 = vector.shape_cast %8 : vector<1x4x239xf32> to vector<4x239xf32>
    %c0_9 = arith.constant 0 : index
    %c0_10 = arith.constant 0 : index
    %c17 = arith.constant 17 : index
    %10 = vector.load %arg1[%c0_9, %c0_10, %c17] : memref<4x4x256xf32, #tpu.memory_space<vmem>>, vector<1x4x239xf32>
    %11 = vector.shape_cast %10 : vector<1x4x239xf32> to vector<4x239xf32>
    %12 = arith.maximumf %5, %7 : vector<4x239xf32>
    %13 = arith.maximumf %9, %11 : vector<4x239xf32>
    %14 = arith.maximumf %12, %13 : vector<4x239xf32>
    %15 = arith.truncf %14 : vector<4x239xf32> to vector<4x239xbf16>
    %cst = arith.constant dense<0.000000e+00> : vector<4x64xf32>
    %16 = tpu.matmul %15, %3, %cst {dimension_numbers = #tpu.dot_dimension_numbers<[1], [0], [0], [1], [0, 0, 1, 1], [], []>} : vector<4x239xbf16>, vector<239x64xbf16>, vector<4x64xf32> -> vector<4x64xf32>
    %c0_11 = arith.constant 0 : index
    %c128 = arith.constant 128 : index
    %17 = vector.load %arg8[%c0_11, %c128] : memref<36x384xf32, #tpu.memory_space<vmem>>, vector<4x64xf32>
    tpu.vector_store %arg8[%c0_11, %c128], %16 {strides = array<i32>} : memref<36x384xf32, #tpu.memory_space<vmem>>, vector<4x64xf32>,
    %c1_12 = arith.constant 1 : index
    %c0_13 = arith.constant 0 : index
    %c0_14 = arith.constant 0 : index
    %18 = vector.load %arg1[%c1_12, %c0_13, %c0_14] : memref<4x4x256xf32, #tpu.memory_space<vmem>>, vector<1x4x239xf32>
    %19 = vector.shape_cast %18 : vector<1x4x239xf32> to vector<4x239xf32>
    %c1_15 = arith.constant 1 : index
    %c0_16 = arith.constant 0 : index
    %c1_17 = arith.constant 1 : index
    %20 = vector.load %arg1[%c1_15, %c0_16, %c1_17] : memref<4x4x256xf32, #tpu.memory_space<vmem>>, vector<1x4x239xf32>
    %21 = vector.shape_cast %20 : vector<1x4x239xf32> to vector<4x239xf32>
    %c1_18 = arith.constant 1 : index
    %c0_19 = arith.constant 0 : index
    %c16_20 = arith.constant 16 : index
    %22 = vector.load %arg1[%c1_18, %c0_19, %c16_20] : memref<4x4x256xf32, #tpu.memory_space<vmem>>, vector<1x4x239xf32>
    %23 = vector.shape_cast %22 : vector<1x4x239xf32> to vector<4x239xf32>
    %c1_21 = arith.constant 1 : index
    %c0_22 = arith.constant 0 : index
    %c17_23 = arith.constant 17 : index
    %24 = vector.load %arg1[%c1_21, %c0_22, %c17_23] : memref<4x4x256xf32, #tpu.memory_space<vmem>>, vector<1x4x239xf32>
    %25 = vector.shape_cast %24 : vector<1x4x239xf32> to vector<4x239xf32>
    %26 = arith.maximumf %19, %21 : vector<4x239xf32>
    %27 = arith.maximumf %23, %25 : vector<4x239xf32>
    %28 = arith.maximumf %26, %27 : vector<4x239xf32>
    %29 = arith.truncf %28 : vector<4x239xf32> to vector<4x239xbf16>
    %cst_24 = arith.constant dense<0.000000e+00> : vector<4x64xf32>
    %30 = tpu.matmul %29, %3, %cst_24 {dimension_numbers = #tpu.dot_dimension_numbers<[1], [0], [0], [1], [0, 0, 1, 1], [], []>} : vector<4x239xbf16>, vector<239x64xbf16>, vector<4x64xf32> -> vector<4x64xf32>
    %c0_25 = arith.constant 0 : index
    %c192 = arith.constant 192 : index
    %31 = vector.load %arg8[%c0_25, %c192] : memref<36x384xf32, #tpu.memory_space<vmem>>, vector<4x64xf32>
    tpu.vector_store %arg8[%c0_25, %c192], %30 {strides = array<i32>} : memref<36x384xf32, #tpu.memory_space<vmem>>, vector<4x64xf32>,
    %c2 = arith.constant 2 : index
    %c0_26 = arith.constant 0 : index
    %c0_27 = arith.constant 0 : index
    %32 = vector.load %arg1[%c2, %c0_26, %c0_27] : memref<4x4x256xf32, #tpu.memory_space<vmem>>, vector<1x4x239xf32>
    %33 = vector.shape_cast %32 : vector<1x4x239xf32> to vector<4x239xf32>
    %c2_28 = arith.constant 2 : index
    %c0_29 = arith.constant 0 : index
    %c1_30 = arith.constant 1 : index
    %34 = vector.load %arg1[%c2_28, %c0_29, %c1_30] : memref<4x4x256xf32, #tpu.memory_space<vmem>>, vector<1x4x239xf32>
    %35 = vector.shape_cast %34 : vector<1x4x239xf32> to vector<4x239xf32>
    %c2_31 = arith.constant 2 : index
    %c0_32 = arith.constant 0 : index
    %c16_33 = arith.constant 16 : index
    %36 = vector.load %arg1[%c2_31, %c0_32, %c16_33] : memref<4x4x256xf32, #tpu.memory_space<vmem>>, vector<1x4x239xf32>
    %37 = vector.shape_cast %36 : vector<1x4x239xf32> to vector<4x239xf32>
    %c2_34 = arith.constant 2 : index
    %c0_35 = arith.constant 0 : index
    %c17_36 = arith.constant 17 : index
    %38 = vector.load %arg1[%c2_34, %c0_35, %c17_36] : memref<4x4x256xf32, #tpu.memory_space<vmem>>, vector<1x4x239xf32>
    %39 = vector.shape_cast %38 : vector<1x4x239xf32> to vector<4x239xf32>
    %40 = arith.maximumf %33, %35 : vector<4x239xf32>
    %41 = arith.maximumf %37, %39 : vector<4x239xf32>
    %42 = arith.maximumf %40, %41 : vector<4x239xf32>
    %43 = arith.truncf %42 : vector<4x239xf32> to vector<4x239xbf16>
    %cst_37 = arith.constant dense<0.000000e+00> : vector<4x64xf32>
    %44 = tpu.matmul %43, %3, %cst_37 {dimension_numbers = #tpu.dot_dimension_numbers<[1], [0], [0], [1], [0, 0, 1, 1], [], []>} : vector<4x239xbf16>, vector<239x64xbf16>, vector<4x64xf32> -> vector<4x64xf32>
    %c0_38 = arith.constant 0 : index
    %c256 = arith.constant 256 : index
    %45 = vector.load %arg8[%c0_38, %c256] : memref<36x384xf32, #tpu.memory_space<vmem>>, vector<4x64xf32>
    tpu.vector_store %arg8[%c0_38, %c256], %44 {strides = array<i32>} : memref<36x384xf32, #tpu.memory_space<vmem>>, vector<4x64xf32>,
    %c3 = arith.constant 3 : index
    %c0_39 = arith.constant 0 : index
    %c0_40 = arith.constant 0 : index
    %46 = vector.load %arg1[%c3, %c0_39, %c0_40] : memref<4x4x256xf32, #tpu.memory_space<vmem>>, vector<1x4x239xf32>
    %47 = vector.shape_cast %46 : vector<1x4x239xf32> to vector<4x239xf32>
    %c3_41 = arith.constant 3 : index
    %c0_42 = arith.constant 0 : index
    %c1_43 = arith.constant 1 : index
    %48 = vector.load %arg1[%c3_41, %c0_42, %c1_43] : memref<4x4x256xf32, #tpu.memory_space<vmem>>, vector<1x4x239xf32>
    %49 = vector.shape_cast %48 : vector<1x4x239xf32> to vector<4x239xf32>
    %c3_44 = arith.constant 3 : index
    %c0_45 = arith.constant 0 : index
    %c16_46 = arith.constant 16 : index
    %50 = vector.load %arg1[%c3_44, %c0_45, %c16_46] : memref<4x4x256xf32, #tpu.memory_space<vmem>>, vector<1x4x239xf32>
    %51 = vector.shape_cast %50 : vector<1x4x239xf32> to vector<4x239xf32>
    %c3_47 = arith.constant 3 : index
    %c0_48 = arith.constant 0 : index
    %c17_49 = arith.constant 17 : index
    %52 = vector.load %arg1[%c3_47, %c0_48, %c17_49] : memref<4x4x256xf32, #tpu.memory_space<vmem>>, vector<1x4x239xf32>
    %53 = vector.shape_cast %52 : vector<1x4x239xf32> to vector<4x239xf32>
    %54 = arith.maximumf %47, %49 : vector<4x239xf32>
    %55 = arith.maximumf %51, %53 : vector<4x239xf32>
    %56 = arith.maximumf %54, %55 : vector<4x239xf32>
    %57 = arith.truncf %56 : vector<4x239xf32> to vector<4x239xbf16>
    %cst_50 = arith.constant dense<0.000000e+00> : vector<4x64xf32>
    %58 = tpu.matmul %57, %3, %cst_50 {dimension_numbers = #tpu.dot_dimension_numbers<[1], [0], [0], [1], [0, 0, 1, 1], [], []>} : vector<4x239xbf16>, vector<239x64xbf16>, vector<4x64xf32> -> vector<4x64xf32>
    %c0_51 = arith.constant 0 : index
    %c320 = arith.constant 320 : index
    %59 = vector.load %arg8[%c0_51, %c320] : memref<36x384xf32, #tpu.memory_space<vmem>>, vector<4x64xf32>
    tpu.vector_store %arg8[%c0_51, %c320], %58 {strides = array<i32>} : memref<36x384xf32, #tpu.memory_space<vmem>>, vector<4x64xf32>,
    %c0_52 = arith.constant 0 : index
    %c128_53 = arith.constant 128 : index
    %60 = vector.load %arg8[%c0_52, %c128_53] : memref<36x384xf32, #tpu.memory_space<vmem>>, vector<4x256xf32>
    %c4 = arith.constant 4 : index
    %c127 = arith.constant 127 : index
    %61 = vector.load %arg8[%c4, %c127] : memref<36x384xf32, #tpu.memory_space<vmem>>, vector<4x256xf32>
    tpu.vector_store %arg8[%c4, %c127], %60 {strides = array<i32>} : memref<36x384xf32, #tpu.memory_space<vmem>>, vector<4x256xf32>,
    %c8 = arith.constant 8 : index
    %c126 = arith.constant 126 : index
    %62 = vector.load %arg8[%c8, %c126] : memref<36x384xf32, #tpu.memory_space<vmem>>, vector<4x256xf32>
    tpu.vector_store %arg8[%c8, %c126], %60 {strides = array<i32>} : memref<36x384xf32, #tpu.memory_space<vmem>>, vector<4x256xf32>,
    %c12 = arith.constant 12 : index
    %c120 = arith.constant 120 : index
    %63 = vector.load %arg8[%c12, %c120] : memref<36x384xf32, #tpu.memory_space<vmem>>, vector<4x256xf32>
    tpu.vector_store %arg8[%c12, %c120], %60 {strides = array<i32>} : memref<36x384xf32, #tpu.memory_space<vmem>>, vector<4x256xf32>,
    %c16_54 = arith.constant 16 : index
    %c119 = arith.constant 119 : index
    %64 = vector.load %arg8[%c16_54, %c119] : memref<36x384xf32, #tpu.memory_space<vmem>>, vector<4x256xf32>
    tpu.vector_store %arg8[%c16_54, %c119], %60 {strides = array<i32>} : memref<36x384xf32, #tpu.memory_space<vmem>>, vector<4x256xf32>,
    %c20 = arith.constant 20 : index
    %c118 = arith.constant 118 : index
    %65 = vector.load %arg8[%c20, %c118] : memref<36x384xf32, #tpu.memory_space<vmem>>, vector<4x256xf32>
    tpu.vector_store %arg8[%c20, %c118], %60 {strides = array<i32>} : memref<36x384xf32, #tpu.memory_space<vmem>>, vector<4x256xf32>,
    %c24 = arith.constant 24 : index
    %c112 = arith.constant 112 : index
    %66 = vector.load %arg8[%c24, %c112] : memref<36x384xf32, #tpu.memory_space<vmem>>, vector<4x256xf32>
    tpu.vector_store %arg8[%c24, %c112], %60 {strides = array<i32>} : memref<36x384xf32, #tpu.memory_space<vmem>>, vector<4x256xf32>,
    %c28 = arith.constant 28 : index
    %c111 = arith.constant 111 : index
    %67 = vector.load %arg8[%c28, %c111] : memref<36x384xf32, #tpu.memory_space<vmem>>, vector<4x256xf32>
    tpu.vector_store %arg8[%c28, %c111], %60 {strides = array<i32>} : memref<36x384xf32, #tpu.memory_space<vmem>>, vector<4x256xf32>,
    %c32 = arith.constant 32 : index
    %c110 = arith.constant 110 : index
    %68 = vector.load %arg8[%c32, %c110] : memref<36x384xf32, #tpu.memory_space<vmem>>, vector<4x256xf32>
    tpu.vector_store %arg8[%c32, %c110], %60 {strides = array<i32>} : memref<36x384xf32, #tpu.memory_space<vmem>>, vector<4x256xf32>,
    %c0_55 = arith.constant 0 : index
    %c128_56 = arith.constant 128 : index
    %69 = vector.load %arg8[%c0_55, %c128_56] : memref<36x384xf32, #tpu.memory_space<vmem>>, vector<36x256xf32>
    %70 = arith.truncf %69 : vector<36x256xf32> to vector<36x256xbf16>
    %c0_57 = arith.constant 0 : index
    %c0_58 = arith.constant 0 : index
    %71 = vector.load %arg3[%c0_57, %c0_58] : memref<8x36xbf16, #tpu.memory_space<vmem>>, vector<8x36xbf16>
    %cst_59 = arith.constant dense<0.000000e+00> : vector<8x256xf32>
    %72 = tpu.matmul %71, %70, %cst_59 {dimension_numbers = #tpu.dot_dimension_numbers<[1], [0], [0], [1], [0, 0, 1, 1], [], []>} : vector<8x36xbf16>, vector<36x256xbf16>, vector<8x256xf32> -> vector<8x256xf32>
    %c0_60 = arith.constant 0 : index
    %c0_61 = arith.constant 0 : index
    %73 = vector.load %arg4[%c0_60, %c0_61] : memref<8x1xf32, #tpu.memory_space<vmem>>, vector<8x1xf32>
    %74 = vector.broadcast %73 : vector<8x1xf32> to vector<8x256xf32>
    %75 = arith.addf %72, %74 : vector<8x256xf32>
    %cst_62 = arith.constant 0.000000e+00 : f32
    %76 = vector.broadcast %cst_62 : f32 to vector<8x256xf32>
    %77 = arith.maximumf %75, %76 : vector<8x256xf32>
    %c0_63 = arith.constant 0 : index
    %c128_64 = arith.constant 128 : index
    %78 = vector.load %arg9[%c0_63, %c128_64] : memref<72x384xf32, #tpu.memory_space<vmem>>, vector<8x256xf32>
    tpu.vector_store %arg9[%c0_63, %c128_64], %77 {strides = array<i32>} : memref<72x384xf32, #tpu.memory_space<vmem>>, vector<8x256xf32>,
    %c8_65 = arith.constant 8 : index
    %c127_66 = arith.constant 127 : index
    %79 = vector.load %arg9[%c8_65, %c127_66] : memref<72x384xf32, #tpu.memory_space<vmem>>, vector<8x256xf32>
    tpu.vector_store %arg9[%c8_65, %c127_66], %77 {strides = array<i32>} : memref<72x384xf32, #tpu.memory_space<vmem>>, vector<8x256xf32>,
    %c16_67 = arith.constant 16 : index
    %c126_68 = arith.constant 126 : index
    %80 = vector.load %arg9[%c16_67, %c126_68] : memref<72x384xf32, #tpu.memory_space<vmem>>, vector<8x256xf32>
    tpu.vector_store %arg9[%c16_67, %c126_68], %77 {strides = array<i32>} : memref<72x384xf32, #tpu.memory_space<vmem>>, vector<8x256xf32>,
    %c24_69 = arith.constant 24 : index
    %c120_70 = arith.constant 120 : index
    %81 = vector.load %arg9[%c24_69, %c120_70] : memref<72x384xf32, #tpu.memory_space<vmem>>, vector<8x256xf32>
    tpu.vector_store %arg9[%c24_69, %c120_70], %77 {strides = array<i32>} : memref<72x384xf32, #tpu.memory_space<vmem>>, vector<8x256xf32>,
    %c32_71 = arith.constant 32 : index
    %c119_72 = arith.constant 119 : index
    %82 = vector.load %arg9[%c32_71, %c119_72] : memref<72x384xf32, #tpu.memory_space<vmem>>, vector<8x256xf32>
    tpu.vector_store %arg9[%c32_71, %c119_72], %77 {strides = array<i32>} : memref<72x384xf32, #tpu.memory_space<vmem>>, vector<8x256xf32>,
    %c40 = arith.constant 40 : index
    %c118_73 = arith.constant 118 : index
    %83 = vector.load %arg9[%c40, %c118_73] : memref<72x384xf32, #tpu.memory_space<vmem>>, vector<8x256xf32>
    tpu.vector_store %arg9[%c40, %c118_73], %77 {strides = array<i32>} : memref<72x384xf32, #tpu.memory_space<vmem>>, vector<8x256xf32>,
    %c48 = arith.constant 48 : index
    %c112_74 = arith.constant 112 : index
    %84 = vector.load %arg9[%c48, %c112_74] : memref<72x384xf32, #tpu.memory_space<vmem>>, vector<8x256xf32>
    tpu.vector_store %arg9[%c48, %c112_74], %77 {strides = array<i32>} : memref<72x384xf32, #tpu.memory_space<vmem>>, vector<8x256xf32>,
    %c56 = arith.constant 56 : index
    %c111_75 = arith.constant 111 : index
    %85 = vector.load %arg9[%c56, %c111_75] : memref<72x384xf32, #tpu.memory_space<vmem>>, vector<8x256xf32>
    tpu.vector_store %arg9[%c56, %c111_75], %77 {strides = array<i32>} : memref<72x384xf32, #tpu.memory_space<vmem>>, vector<8x256xf32>,
    %c64 = arith.constant 64 : index
    %c110_76 = arith.constant 110 : index
    %86 = vector.load %arg9[%c64, %c110_76] : memref<72x384xf32, #tpu.memory_space<vmem>>, vector<8x256xf32>
    tpu.vector_store %arg9[%c64, %c110_76], %77 {strides = array<i32>} : memref<72x384xf32, #tpu.memory_space<vmem>>, vector<8x256xf32>,
    %c0_77 = arith.constant 0 : index
    %c128_78 = arith.constant 128 : index
    %87 = vector.load %arg9[%c0_77, %c128_78] : memref<72x384xf32, #tpu.memory_space<vmem>>, vector<72x256xf32>
    %88 = arith.truncf %87 : vector<72x256xf32> to vector<72x256xbf16>
    %c0_79 = arith.constant 0 : index
    %c0_80 = arith.constant 0 : index
    %89 = vector.load %arg5[%c0_79, %c0_80] : memref<8x72xbf16, #tpu.memory_space<vmem>>, vector<8x72xbf16>
    %cst_81 = arith.constant dense<0.000000e+00> : vector<8x256xf32>
    %90 = tpu.matmul %89, %88, %cst_81 {dimension_numbers = #tpu.dot_dimension_numbers<[1], [0], [0], [1], [0, 0, 1, 1], [], []>} : vector<8x72xbf16>, vector<72x256xbf16>, vector<8x256xf32> -> vector<8x256xf32>
    %c0_82 = arith.constant 0 : index
    %c0_83 = arith.constant 0 : index
    %91 = vector.load %arg6[%c0_82, %c0_83] : memref<8x1xf32, #tpu.memory_space<vmem>>, vector<8x1xf32>
    %92 = vector.broadcast %91 : vector<8x1xf32> to vector<8x256xf32>
    %93 = arith.addf %90, %92 : vector<8x256xf32>
    %cst_84 = arith.constant 0.000000e+00 : f32
    %94 = vector.broadcast %cst_84 : f32 to vector<8x256xf32>
    %95 = arith.maximumf %93, %94 : vector<8x256xf32>
    %c0_85 = arith.constant 0 : index
    %c0_86 = arith.constant 0 : index
    %c0_87 = arith.constant 0 : index
    %96 = vector.load %arg7[%c0_85, %c0_86, %c0_87] : memref<1x8x256xf32, #tpu.memory_space<vmem>>, vector<1x8x256xf32>
    %97 = vector.shape_cast %96 : vector<1x8x256xf32> to vector<8x256xf32>
    %98 = vector.shape_cast %95 : vector<8x256xf32> to vector<1x8x256xf32>
    tpu.vector_store %arg7[%c0_85, %c0_86, %c0_87], %98 {strides = array<i32>} : memref<1x8x256xf32, #tpu.memory_space<vmem>>, vector<1x8x256xf32>,
    return
  }
  func.func @transform_0(%arg0: i32) -> (i32, i32, i32) {
    %c0_i32 = arith.constant 0 : i32
    %c0_i32_0 = arith.constant 0 : i32
    %c0_i32_1 = arith.constant 0 : i32
    return %arg0, %c0_i32, %c0_i32_0 : i32, i32, i32
  }
  func.func @transform_1(%arg0: i32) -> (i32, i32) {
    %c0_i32 = arith.constant 0 : i32
    %c0_i32_0 = arith.constant 0 : i32
    %c0_i32_1 = arith.constant 0 : i32
    return %c0_i32, %c0_i32_0 : i32, i32
  }
  func.func @transform_2(%arg0: i32) -> (i32, i32) {
    %c0_i32 = arith.constant 0 : i32
    %c0_i32_0 = arith.constant 0 : i32
    %c0_i32_1 = arith.constant 0 : i32
    return %c0_i32, %c0_i32_0 : i32, i32
  }
  func.func @transform_3(%arg0: i32) -> (i32, i32) {
    %c0_i32 = arith.constant 0 : i32
    %c0_i32_0 = arith.constant 0 : i32
    %c0_i32_1 = arith.constant 0 : i32
    return %c0_i32, %c0_i32_0 : i32, i32
  }
  func.func @transform_4(%arg0: i32) -> (i32, i32) {
    %c0_i32 = arith.constant 0 : i32
    %c0_i32_0 = arith.constant 0 : i32
    %c0_i32_1 = arith.constant 0 : i32
    return %c0_i32, %c0_i32_0 : i32, i32
  }
  func.func @transform_5(%arg0: i32) -> (i32, i32) {
    %c0_i32 = arith.constant 0 : i32
    %c0_i32_0 = arith.constant 0 : i32
    %c0_i32_1 = arith.constant 0 : i32
    return %c0_i32, %c0_i32_0 : i32, i32
  }
  func.func @transform_6(%arg0: i32) -> (i32, i32, i32) {
    %c0_i32 = arith.constant 0 : i32
    %c0_i32_0 = arith.constant 0 : i32
    %c0_i32_1 = arith.constant 0 : i32
    return %arg0, %c0_i32, %c0_i32_0 : i32, i32, i32
  }
}

</mosaic_0001>

<bundles_post_ra>
// kernel: tpu_custom_call.1
= control target key start
LH: loop header
LB: loop body
LE: loop exit
PB: predicated region body
PF: predicated region fallthrough
CT: control target
= control target key end

     0   :  { %11 = vsyncpa [#allocation5], 0  ;;  %s1671_s0 = inlined_call_operand.vmem [shape: f32[8,4,256], index: 0, kind: input, shape index: {}]   ;;  %s1672_s1 = inlined_call_operand.vmem [shape: bf16[239,64], index: 1, kind: input, shape index: {}]   ;;  %s1673_s2 = inlined_call_operand.vmem [shape: bf16[8,36], index: 2, kind: input, shape index: {}]   ;;  %s1674_s3 = inlined_call_operand.vmem [shape: f32[8,1], index: 3, kind: input, shape index: {}]   ;;  %s1675_s4 = inlined_call_operand.vmem [shape: bf16[8,72], index: 4, kind: input, shape index: {}]   ;;  %s1676_s5 = inlined_call_operand.vmem [shape: f32[8,1], index: 5, kind: input, shape index: {}]   ;;  %s1677_s6 = inlined_call_operand.hbm [shape: f32[2,8,256], index: 6, kind: output, shape index: {}]  }
   0x1   :  { %13 = vsyncpa [#allocation5 + $0x1], 0  ;;  %s1352_s21 = smov 0   ;;  %s1354_s22 = smov 0  }
   0x2   :  { %s1356_s23 = smov 0   ;;  %s1358_s24 = smov 0  }
   0x3 LB: > { %s1373_s25 = sadd.s32 4294967295, %s1303_s24   ;;  %s1085_s26 = sadd.s32 4294967294, %s1303_s24   ;;  %s1303_s24 = sphi %s1358_s24, %s1683_s24   ;;  %s1299_s23 = sphi %s1356_s23, %s1682_s23   ;;  %s1295_s22 = sphi %s1354_s22, %s1681_s22   ;;  %s1291_s21 = sphi %s1352_s21, %s1680_s21  }
   0x4   : > { %s1377_s27 = sadd.s32 1, %s1303_s24   ;;  %s157_s28 = sadd.s32 1, %s1299_s23 }
   0x5   : > { %s154_s29 = ssub.s32 %s1303_s24, %s1377_s27  ;;  %p167_p0 = scmp.ne.s32.totalorder %s1299_s23, %s1295_s22 }
   0x6   : > { %p155_p1 = scmp.eq.s32.totalorder %s154_s29, 0  ;;  %p168_p2 = scmp.eq.s32.totalorder %s1373_s25, 1 }
   0x7   : > { %p173_p3 = scmp.ne.s32.totalorder %s1295_s22, %s1291_s21  ;;  %p174_p4 = scmp.eq.s32.totalorder %s1085_s26, 1 }
   0x8   : > { %s1388_s30 = scalar_select %p155_p1, %s1299_s23, %s157_s28  }
   0x9   : > { %p1390_p5 = por %p168_p2, %p167_p0  ;;  %p1394_p6 = por %p174_p4, %p173_p3 }
   0xa   : > { %p1088_p7 = scmp.ge.s32.totalorder %s1303_s24, 1  ;;  %p217_p8 = scmp.lt.s32.totalorder %s1303_s24, 3 }
   0xc   : > { %p218_p9 = pnand %p1088_p7, %p217_p8 }
   0xd   : > { %s245_s9 = sand.u32 (!%p218_p9), 1, %s1295_s22   ;;  %s1090_s10 = sshll.u32 (!%p218_p9), %s1373_s25, 2 }
   0xe   : > { %221 = sbr.rel (%p218_p9) target bundleno = 1135 (0x46f), region = 44  ;;  %s1089_s11 = sshll.u32 (!%p218_p9), %s245_s9, 4 }
   0xf   : > { %p249_p10 = scmp.lt.s32.totalorder (!%p218_p9), %s1090_s10, 7  ;;  %s1407_s16 = scalar_lea.vmem (!%p218_p9), [#allocation4], %s1089_s11 }
  0x10   : > { %p1093_p11 = scmp.ne.s32.totalorder (!%p218_p9), %s1373_s25, 0 }
  0x13   : > { %s1685_s10 = smov (!%p249_p10, %s1090_s10), 7  ;;  %259 = sbr.rel (%p1093_p11) target bundleno = 43 (0x2b), region = 48 }
  0x14   : > { %s1170_s12 = sshll.u32 %s1685_s10, 3 }
  0x15   : > { %s253_s15 = scalar_lea.vmem %s1671_s0, %s1170_s12 }
  0x18   : > { %v1305_v0 = vmov 0.0  }
  0x19   : > { %261 = vst [vmem:[#allocation2 + $0x8] sm:$0xff] %v1305_v0 }
  0x1a   : > { %262 = vst [vmem:[#allocation2 + $0x10] sm:$0xff] %v1305_v0 }
  0x1b   : > { %264 = vst [vmem:[#allocation2 + $0x20] sm:$0xff] %v1305_v0 }
  0x1c   : > { %265 = vst [vmem:[#allocation2 + $0x28] sm:$0xff] %v1305_v0 }
  0x1d   : > { %267 = vst [vmem:[#allocation2 + $0x38] sm:$0xff] %v1305_v0 }
  0x1e   : > { %268 = vst [vmem:[#allocation2 + $0x40] sm:$0xff] %v1305_v0 }
  0x1f   : > { %270 = vst [vmem:[#allocation2 + $0x50] sm:$0xff] %v1305_v0 }
  0x20   : > { %271 = vst [vmem:[#allocation2 + $0x58] sm:$0xff] %v1305_v0 }
  0x21   : > { %273 = vst [vmem:[#allocation2 + $0x68] sm:$0xf] %v1305_v0 }
  0x22   : > { %274 = vst [vmem:[#allocation2 + $0x70] sm:$0xf] %v1305_v0 }
  0x23   : > { %280 = vst [vmem:[#allocation3 + $0x28] sm:$0xff] %v1305_v0 }
  0x24   : > { %283 = vst [vmem:[#allocation3 + $0x40] sm:$0xff] %v1305_v0 }
  0x25   : > { %286 = vst [vmem:[#allocation3 + $0x58] sm:$0xff] %v1305_v0 }
  0x26   : > { %289 = vst [vmem:[#allocation3 + $0x70] sm:$0xff] %v1305_v0 }
  0x27   : > { %292 = vst [vmem:[#allocation3 + $0x88] sm:$0xff] %v1305_v0 }
  0x28   : > { %295 = vst [vmem:[#allocation3 + $0xa0] sm:$0xff] %v1305_v0 }
  0x29   : > { %298 = vst [vmem:[#allocation3 + $0xb8] sm:$0xff] %v1305_v0 }
  0x2a   : > { %301 = vst [vmem:[#allocation3 + $0xd0] sm:$0xff] %v1305_v0 }
  0x2b PF: > { %v1157_v1 = vld [vmem:[%s253_s15 + $0x10] sm:$0xff]  ;;  %v332_v2 = vld [vmem:[%s253_s15] sm:$0xff]  ;;  %s1306_s17 = smov 127   ;;  %v1159_v3 = vld [vmem:[%s253_s15 + $0x18] sm:$0xff]  ;;  %vm450_vm0 = vcmask 1046528   ;;  %vm451_vm1 = vcmask 1047552  }
  0x2c   : > { %547 = vrot.lane.b32.xlu1 %v1157_v1, %s1306_s17  ;;  %334 = vrot.lane.b32.xlu0 %v332_v2, %s1306_s17  ;;  %v1155_v4 = vld [vmem:[%s253_s15 + $0x8] sm:$0xff]  ;;  %v1185_v5 = vld [vmem:[%s1672_s1 + $0x70] sm:$0xff]  ;;  %v1307_v7 = vmov 65535   ;;  %vm337_vm2 = vcmask 1039360   ;;  %s1308_s28 = smov 112   ;;  %vm345_vm3 = vcmask 916480  }
  0x2d   : > { %v1420_v6 = vld [vmem:[%s1672_s1 + $0x38] sm:$0xff]  ;;  %v452_v8 = vsel %vm450_vm0, 4294967295, %v1307_v7  ;;  %v1426_v10 = vld [vmem:[%s1672_s1 + $0x30] sm:$0xff]  ;;  %v1435_v12 = vld [vmem:[%s1672_s1 + $0x68] sm:$0xff]  ;;  %vm446_vm4 = vcmask 908288   ;;  %vm483_vm5 = vcmask 519168  }
  0x2e   : > { %v453_v9 = vsel %vm451_vm1, %v452_v8, 0  ;;  %457 = vmatpush.bf16.msra.mxu0 %v1420_v6  ;;  %512 = vmatpush.bf16.msra.mxu2 %v1420_v6  ;;  %v1442_v13 = vld [vmem:[%s1672_s1 + $0x28] sm:$0xff]  ;;  %v1449_v14 = vld [vmem:[%s1672_s1 + $0x60] sm:$0xff]  ;;  %v1463_v16 = vld [vmem:[%s1672_s1 + $0x58] sm:$0xff]  ;;  %s1309_s12 = smov 64   ;;  %vm542_vm6 = vcmask 1043968  }
  0x2f   : > { %v1429_v11 = vand.u32 %v1185_v5, %v453_v9  ;;  %v1456_v15 = vld [vmem:[%s1672_s1 + $0x20] sm:$0xff]  ;;  %v1181_v33 = vld [vmem:[%s1672_s1 + $0x50] sm:$0xff]  ;;  %v1174_v34 = vld [vmem:[%s1672_s1 + $0x18] sm:$0xff]  ;;  %s1310_s13 = smov 110   ;;  %s1311_s14 = smov 119   ;;  %vm761_vm7 = vcmask 900096  }
  0x30   : > { %v1180_v35 = vld [vmem:[%s1672_s1 + $0x48] sm:$0xff]  ;;  %v1173_v36 = vld [vmem:[%s1672_s1 + $0x10] sm:$0xff]  ;;  %v1179_v37 = vld [vmem:[%s1672_s1 + $0x40] sm:$0xff]  ;;  %s1312_s15 = smov 118   ;;  %s1313_s18 = smov 111   ;;  %vm769_vm8 = vcmask 896000  }
  0x31   : > { %471 = vmatpush.bf16.msra.mxu1 %v1429_v11  ;;  %526 = vmatpush.bf16.msra.mxu3 %v1429_v11  ;;  %v1172_v38 = vld [vmem:[%s1672_s1 + $0x8] sm:$0xff]  ;;  %v1171_v39 = vld [vmem:[%s1672_s1] sm:$0xff]  ;;  %s1314_s19 = smov 126   ;;  %s1315_s20 = smov 120   ;;  %vm742_vm9 = vcmask 912384   ;;  %vm798_vm10 = vcmask 1041408  }
  0x32   : > { %458 = vmatpush.bf16.msra.mxu0 %v1426_v10  ;;  %513 = vmatpush.bf16.msra.mxu2 %v1426_v10  ;;  %vm679_vm11 = vcmask 1031168   ;;  %vm687_vm12 = vcmask 1027072   ;;  %vm707_vm13 = vcmask 973824   ;;  %vm715_vm14 = vcmask 969728  }
  0x33   : > { %vm721_vm15 = vcmask 965632   ;;  %vm729_vm0 = vcmask 965636   ;;  %vm755_vm1 = vcmask 908292  }
  0x34   : > { %601 = vrot.lane.b32.xlu1 %v1159_v3, %s1306_s17  ;;  %488 = vrot.lane.b32.xlu0 %v1155_v4, %s1306_s17 }
  0x35   : > { %472 = vmatpush.bf16.msra.mxu1 %v1435_v12  ;;  %527 = vmatpush.bf16.msra.mxu3 %v1435_v12 }
  0x36   : > { %459 = vmatpush.bf16.msra.mxu0 %v1442_v13  ;;  %514 = vmatpush.bf16.msra.mxu2 %v1442_v13 }
  0x39   : > { %473 = vmatpush.bf16.msra.mxu1 %v1449_v14  ;;  %528 = vmatpush.bf16.msra.mxu3 %v1449_v14 }
  0x3a   : > { %460 = vmatpush.bf16.msra.mxu0 %v1456_v15  ;;  %515 = vmatpush.bf16.msra.mxu2 %v1456_v15 }
  0x3d   : > { %474 = vmatpush.bf16.msra.mxu1 %v1463_v16  ;;  %529 = vmatpush.bf16.msra.mxu3 %v1463_v16 }
  0x3e   : > { %461 = vmatpush.bf16.msra.mxu0 %v1174_v34  ;;  %516 = vmatpush.bf16.msra.mxu2 %v1174_v34 }
  0x41   : > { %475 = vmatpush.bf16.msra.mxu1 %v1181_v33  ;;  %530 = vmatpush.bf16.msra.mxu3 %v1181_v33 }
  0x42   : > { %462 = vmatpush.bf16.msra.mxu0 %v1173_v36  ;;  %517 = vmatpush.bf16.msra.mxu2 %v1173_v36 }
  0x45   : > { %476 = vmatpush.bf16.msra.mxu1 %v1180_v35  ;;  %531 = vmatpush.bf16.msra.mxu3 %v1180_v35 }
  0x46   : > { %463 = vmatpush.bf16.msra.mxu0 %v1172_v38  ;;  %518 = vmatpush.bf16.msra.mxu2 %v1172_v38 }
  0x49   : > { %477 = vmatpush.bf16.msra.mxu1 %v1179_v37  ;;  %532 = vmatpush.bf16.msra.mxu3 %v1179_v37 }
  0x4a   : > { %464 = vmatpush.bf16.msra.mxu0 %v1171_v39  ;;  %519 = vmatpush.bf16.msra.mxu2 %v1171_v39 }
  0x4d   : > { %571 = vmatpush.bf16.msrb.mxu1 %v1420_v6  ;;  %585 = vmatpush.bf16.msrb.mxu3 %v1429_v11 }
  0x4e   : > { %625 = vmatpush.bf16.msrb.mxu0 %v1420_v6  ;;  %639 = vmatpush.bf16.msrb.mxu2 %v1429_v11 }
  0x51   : > { %572 = vmatpush.bf16.msrb.mxu1 %v1426_v10  ;;  %586 = vmatpush.bf16.msrb.mxu3 %v1435_v12 }
  0x52   : > { %626 = vmatpush.bf16.msrb.mxu0 %v1426_v10  ;;  %640 = vmatpush.bf16.msrb.mxu2 %v1435_v12 }
  0x55   : > { %573 = vmatpush.bf16.msrb.mxu1 %v1442_v13  ;;  %587 = vmatpush.bf16.msrb.mxu3 %v1449_v14 }
  0x56   : > { %627 = vmatpush.bf16.msrb.mxu0 %v1442_v13  ;;  %641 = vmatpush.bf16.msrb.mxu2 %v1449_v14 }
  0x59   : > { %574 = vmatpush.bf16.msrb.mxu1 %v1456_v15  ;;  %588 = vmatpush.bf16.msrb.mxu3 %v1463_v16 }
  0x5a   : > { %628 = vmatpush.bf16.msrb.mxu0 %v1456_v15  ;;  %642 = vmatpush.bf16.msrb.mxu2 %v1463_v16 }
  0x5d   : > { %575 = vmatpush.bf16.msrb.mxu1 %v1174_v34  ;;  %589 = vmatpush.bf16.msrb.mxu3 %v1181_v33 }
  0x5e   : > { %629 = vmatpush.bf16.msrb.mxu0 %v1174_v34  ;;  %643 = vmatpush.bf16.msrb.mxu2 %v1181_v33 }
  0x61   : > { %576 = vmatpush.bf16.msrb.mxu1 %v1173_v36  ;;  %590 = vmatpush.bf16.msrb.mxu3 %v1180_v35 }
  0x62   : > { %630 = vmatpush.bf16.msrb.mxu0 %v1173_v36  ;;  %644 = vmatpush.bf16.msrb.mxu2 %v1180_v35 }
  0x65   : > { %577 = vmatpush.bf16.msrb.mxu1 %v1172_v38  ;;  %591 = vmatpush.bf16.msrb.mxu3 %v1179_v37 }
  0x66   : > { %631 = vmatpush.bf16.msrb.mxu0 %v1172_v38  ;;  %645 = vmatpush.bf16.msrb.mxu2 %v1179_v37 }
  0x69   : > { %578 = vmatpush.bf16.msrb.mxu1 %v1171_v39 }
  0x6a   : > { %632 = vmatpush.bf16.msrb.mxu0 %v1171_v39 }
  0x9e   : > { %v548_v17 = vpop.permute.xlu1 %547  ;;  %v335_v18 = vpop.permute.xlu0 %334 }
  0x9f   : > { %v549_v19 = vrot.slane %v548_v17, 4  ;;  %v336_v20 = vrot.slane %v335_v18, 4 }
  0xa1   : > { %v550_v21 = vsel %vm337_vm2, %v548_v17, %v549_v19  ;;  %v338_v22 = vsel %vm337_vm2, %v335_v18, %v336_v20 }
  0xa2   : > { %v1472_v23 = vmax.f32 %v1157_v1, %v550_v21  ;;  %v1474_v24 = vmax.f32 %v332_v2, %v338_v22 }
  0xa4   : > { %554 = vrot.lane.b32.xlu0 %v1472_v23, %s1308_s28  ;;  %342 = vrot.lane.b32.xlu2 %v1474_v24, %s1308_s28 }
  0xa6   : > { %v602_v25 = vpop.permute.xlu1 %601  ;;  %v489_v26 = vpop.permute.xlu0 %488 }
  0xa7   : > { %v603_v27 = vrot.slane %v602_v25, 4  ;;  %v490_v28 = vrot.slane %v489_v26, 4 }
  0xa9   : > { %v604_v29 = vsel %vm337_vm2, %v602_v25, %v603_v27  ;;  %v491_v30 = vsel %vm337_vm2, %v489_v26, %v490_v28 }
  0xaa   : > { %v1482_v31 = vmax.f32 %v1159_v3, %v604_v29  ;;  %v1484_v32 = vmax.f32 %v1155_v4, %v491_v30 }
  0xac   : > { %608 = vrot.lane.b32.xlu1 %v1482_v31, %s1308_s28  ;;  %495 = vrot.lane.b32.xlu2 %v1484_v32, %s1308_s28 }
  0xfe   : > { %v343_v40 = vpop.permute.xlu2 %342 }
  0xff   : > { %v344_v41 = vrot.slane %v343_v40, 4 }
 0x101   : > { %v346_v42 = vsel %vm345_vm3, %v343_v40, %v344_v41 }
 0x102   : > { %v348_v43 = vmax.f32 %v1474_v24, %v346_v42 }
 0x104   : > { %350 = vst [vmem:[#allocation1] ss:$2 sm:$0xff] %v348_v43 }
 0x106   : > { %v496_v44 = vpop.permute.xlu2 %495 }
 0x107   : > { %v497_v45 = vrot.slane %v496_v44, 4 }
 0x109   : > { %v498_v46 = vsel %vm345_vm3, %v496_v44, %v497_v45 }
 0x10a   : > { %v500_v47 = vmax.f32 %v1484_v32, %v498_v46 }
 0x10b   : > { %v351_v48 = vld.sshfl [vmem:[#allocation1] sm:$0xff pattern:$0x75316420]  ;;  %v352_v49 = vld.sshfl [vmem:[#allocation1 + $0x8] sm:$0xff pattern:$0x75316420] }
 0x10c   : > { %v355_v50 = vpack.c.bf16 %v351_v48, %v351_v48  ;;  %v356_v51 = vpack.c.bf16 %v352_v49, %v352_v49  ;;  %502 = vst [vmem:[#allocation1] ss:$2 sm:$0xff] %v500_v47 }
 0x10e   : > { %465 = vmatmul.bf16.vlgmr.msra.gmra.mxu0 %v355_v50  ;;  %1154 = vmatmul.msk.bf16.vlgmr.msra.gmra.mxu1 %vm446_vm4, %v356_v51 }
 0x113   : > { %v503_v52 = vld.sshfl [vmem:[#allocation1] sm:$0xff pattern:$0x75316420]  ;;  %v504_v53 = vld.sshfl [vmem:[#allocation1 + $0x8] sm:$0xff pattern:$0x75316420] }
 0x114   : > { %v507_v54 = vpack.c.bf16 %v503_v52, %v503_v52  ;;  %v508_v55 = vpack.c.bf16 %v504_v53, %v504_v53 }
 0x116   : > { %v555_v56 = vpop.permute.xlu0 %554  ;;  %520 = vmatmul.bf16.vlgmr.msra.gmra.mxu2 %v507_v54  ;;  %1156 = vmatmul.msk.bf16.vlgmr.msra.gmra.mxu3 %vm446_vm4, %v508_v55  ;;  %v788_v55 = vld [vmem:[%s1674_s3] sm:$0xff] }
 0x117   : > { %v556_v57 = vrot.slane %v555_v56, 4 }
 0x119   : > { %v557_v58 = vsel %vm345_vm3, %v555_v56, %v556_v57  ;;  %v1316_v57 = vmov 0  }
 0x11a   : > { %v559_v59 = vmax.f32 %v1472_v23, %v557_v58  ;;  %1238 = vset.pattern.permute.xlu2 %v1316_v57  ;;  %1239 = vset.pattern.permute.xlu1 %v1316_v57 }
 0x11b   : > { %1240 = vset.pattern.permute.xlu0 %v1316_v57 }
 0x11c   : > { %561 = vst [vmem:[#allocation1] ss:$2 sm:$0xff] %v559_v59 }
 0x11e   : > { %v609_v60 = vpop.permute.xlu1 %608 }
 0x11f   : > { %v610_v61 = vrot.slane %v609_v60, 4 }
 0x121   : > { %v611_v62 = vsel %vm345_vm3, %v609_v60, %v610_v61 }
 0x122   : > { %v613_v63 = vmax.f32 %v1482_v31, %v611_v62 }
 0x123   : > { %v562_v0 = vld.sshfl [vmem:[#allocation1] sm:$0xff pattern:$0x75316420]  ;;  %v563_v1 = vld.sshfl [vmem:[#allocation1 + $0x8] sm:$0xff pattern:$0x75316420] }
 0x124   : > { %v566_v2 = vpack.c.bf16 %v562_v0, %v562_v0  ;;  %v567_v3 = vpack.c.bf16 %v563_v1, %v563_v1  ;;  %615 = vst [vmem:[#allocation1] ss:$2 sm:$0xff] %v613_v63 }
 0x126   : > { %579 = vmatmul.bf16.vlgmr.msrb.gmra.mxu1 %v566_v2  ;;  %1158 = vmatmul.msk.bf16.vlgmr.msrb.gmra.mxu3 %vm446_vm4, %v567_v3 }
 0x12b   : > { %v616_v4 = vld.sshfl [vmem:[#allocation1] sm:$0xff pattern:$0x75316420]  ;;  %v617_v5 = vld.sshfl [vmem:[#allocation1 + $0x8] sm:$0xff pattern:$0x75316420] }
 0x12c   : > { %v620_v6 = vpack.c.bf16 %v616_v4, %v616_v4  ;;  %v621_v7 = vpack.c.bf16 %v617_v5, %v617_v5 }
 0x12e   : > { %633 = vmatmul.bf16.vlgmr.msrb.gmra.mxu0 %v620_v6  ;;  %1160 = vmatmul.msk.bf16.vlgmr.msrb.gmra.mxu2 %vm446_vm4, %v621_v7 }
 0x18b   : > { %v466_v8 = vpop.f32.mrf.mxu0  ;;  %v479_v9 = vpop.f32.mrf.mxu1 }
 0x18c   : > { %v480_v10 = vadd.f32 %v479_v9, %v466_v8 }
 0x18e   : > { %484 = vst.msk [vmem:[#allocation2 + $0x8] sm:$0xf] %vm483_vm5, %v480_v10 }
 0x193   : > { %v468_v11 = vpop.f32.mrf.mxu0  ;;  %v481_v12 = vpop.f32.mrf.mxu1 }
 0x199   : > { %v521_v13 = vpop.f32.mrf.mxu2  ;;  %v534_v14 = vpop.f32.mrf.mxu3 }
 0x19a   : > { %v535_v15 = vadd.f32 %v534_v14, %v521_v13  ;;  %v787_v13 = vld [vmem:[%s1673_s2] sm:$0xf] }
 0x19c   : > { %539 = vrot.lane.b32.xlu2 %v535_v15, %s1309_s12 }
 0x1a1   : > { %v523_v16 = vpop.f32.mrf.mxu2  ;;  %v536_v17 = vpop.f32.mrf.mxu3 }
 0x1a3   : > { %v580_v18 = vpop.f32.mrf.mxu1 }
 0x1a9   : > { %v593_v19 = vpop.f32.mrf.mxu3 }
 0x1aa   : > { %v594_v20 = vadd.f32 %v593_v19, %v580_v18 }
 0x1ab   : > { %v582_v21 = vpop.f32.mrf.mxu1  ;;  %v634_v22 = vpop.f32.mrf.mxu0 }
 0x1ac   : > { %597 = vst.msk [vmem:[#allocation2 + $0x10] sm:$0xf] %vm483_vm5, %v594_v20  ;;  %vm673_vm5 = vcmask 1039364  }
 0x1b1   : > { %v595_v23 = vpop.f32.mrf.mxu3  ;;  %v647_v24 = vpop.f32.mrf.mxu2 }
 0x1b2   : > { %v648_v25 = vadd.f32 %v647_v24, %v634_v22 }
 0x1b3   : > { %v636_v26 = vpop.f32.mrf.mxu0 }
 0x1b4   : > { %652 = vrot.lane.b32.xlu0 %v648_v25, %s1309_s12 }
 0x1b9   : > { %v649_v27 = vpop.f32.mrf.mxu2 }
 0x1f6   : > { %v540_v28 = vpop.permute.xlu2 %539 }
 0x1f7   : > { %543 = vst.msk [vmem:[#allocation2 + $0x8] sm:$0xf] %vm542_vm6, %v540_v28 }
 0x1fe   : > { %v656_v29 = vld [vmem:[#allocation2 + $0x8] sm:$0xf] }
 0x1ff   : > { %757 = vrot.lane.b32.xlu1 %v656_v29, %s1310_s13  ;;  %703 = vrot.lane.b32.xlu0 %v656_v29, %s1311_s14  ;;  %v660_v30 = vrot.slane %v656_v29, 4 }
 0x201   : > { %717 = vrot.lane.b32.xlu2 %v660_v30, %s1312_s15 }
 0x207   : > { %731 = vrot.lane.b32.xlu1 %v656_v29, %s1308_s28  ;;  %744 = vrot.lane.b32.xlu0 %v660_v30, %s1313_s18 }
 0x209   : > { %662 = vrot.lane.b32.xlu2 %v660_v30, %s1306_s17 }
 0x20f   : > { %675 = vrot.lane.b32.xlu1 %v656_v29, %s1314_s19 }
 0x226   : > { %v653_v31 = vpop.permute.xlu0 %652 }
 0x227   : > { %655 = vst.msk [vmem:[#allocation2 + $0x10] sm:$0xf] %vm542_vm6, %v653_v31  ;;  %vm701_vm6 = vcmask 982020  }
 0x22e   : > { %v657_v32 = vld [vmem:[#allocation2 + $0x10] sm:$0xf] }
 0x22f   : > { %705 = vrot.lane.b32.xlu1 %v657_v32, %s1311_s14  ;;  %759 = vrot.lane.b32.xlu2 %v657_v32, %s1310_s13  ;;  %v661_v33 = vrot.slane %v657_v32, 4 }
 0x231   : > { %719 = vrot.lane.b32.xlu0 %v661_v33, %s1312_s15 }
 0x237   : > { %733 = vrot.lane.b32.xlu2 %v657_v32, %s1308_s28  ;;  %746 = vrot.lane.b32.xlu1 %v661_v33, %s1313_s18 }
 0x239   : > { %664 = vrot.lane.b32.xlu0 %v661_v33, %s1306_s17 }
 0x23f   : > { %677 = vrot.lane.b32.xlu2 %v657_v32, %s1314_s19  ;;  %691 = vrot.lane.b32.xlu1 %v661_v33, %s1315_s20 }
 0x241   : > { %689 = vrot.lane.b32.xlu0 %v660_v30, %s1315_s20 }
 0x247   : > { %791 = vperm.xlu2 %1238, %v788_v55  }
 0x25b   : > { %v718_v34 = vpop.permute.xlu2 %717 }
 0x263   : > { %v663_v35 = vpop.permute.xlu2 %662 }
 0x271   : > { %v758_v36 = vpop.permute.xlu1 %757  ;;  %v704_v37 = vpop.permute.xlu0 %703 }
 0x279   : > { %v732_v38 = vpop.permute.xlu1 %731  ;;  %v745_v39 = vpop.permute.xlu0 %744 }
 0x281   : > { %v676_v40 = vpop.permute.xlu1 %675 }
 0x289   : > { %v760_v41 = vpop.permute.xlu2 %759 }
 0x28a   : > { %v762_v42 = vsel %vm761_vm7, %v758_v36, %v760_v41  ;;  %770 = vst.msk [vmem:[#allocation2 + $0x70] sm:$0xf] %vm769_vm8, %v760_v41  ;;  %vm693_vm8 = vcmask 982016  }
 0x28b   : > { %768 = vst [vmem:[#allocation2 + $0x68] sm:$0xf] %v762_v42 }
 0x291   : > { %v734_v43 = vpop.permute.xlu2 %733  ;;  %v780_v44 = vld [vmem:[#allocation2 + $0x70] sm:$0xf] }
 0x292   : > { %v735_v45 = vsel %vm345_vm3, %v732_v38, %v734_v43  ;;  %743 = vst.msk [vmem:[#allocation2 + $0x58] sm:$0xf] %vm742_vm9, %v734_v43  ;;  %v786_v46 = vpack.c.bf16 %v780_v44, %v780_v44  ;;  %v779_v47 = vld [vmem:[#allocation2 + $0x68] sm:$0xf]  ;;  %vm794_vm9 = vcmask 293888  }
 0x293   : > { %741 = vst [vmem:[#allocation2 + $0x50] sm:$0xf] %v735_v45  ;;  %v785_v48 = vpack.c.bf16 %v779_v47, %v779_v47 }
 0x294   : > { %v803_v49 = vsel %vm798_vm10, %v786_v46, 0 }
 0x295   : > { %823 = vmatpush.bf16.msra.mxu1 %v803_v49  ;;  %v800_v50 = vsel %vm798_vm10, %v785_v48, 0  ;;  %vm972_vm10 = vcmask 1043456  }
 0x296   : > { %810 = vmatpush.bf16.msra.mxu3 %v800_v50  ;;  %v962_v50 = vld [vmem:[%s1676_s5] sm:$0xff] }
 0x299   : > { %v678_v51 = vpop.permute.xlu2 %677 }
 0x29a   : > { %v680_v52 = vsel %vm679_vm11, %v676_v40, %v678_v51  ;;  %688 = vst.msk [vmem:[#allocation2 + $0x28] sm:$0xf] %vm687_vm12, %v678_v51 }
 0x29b   : > { %686 = vst [vmem:[#allocation2 + $0x20] sm:$0xf] %v680_v52 }
 0x2a1   : > { %v706_v53 = vpop.permute.xlu1 %705  ;;  %v792_v15 = vpop.permute.xlu2 %791 }
 0x2a2   : > { %v708_v54 = vsel %vm707_vm13, %v704_v37, %v706_v53  ;;  %716 = vst.msk [vmem:[#allocation2 + $0x40] sm:$0xf] %vm715_vm14, %v706_v53 }
 0x2a3   : > { %714 = vst [vmem:[#allocation2 + $0x38] sm:$0xf] %v708_v54  ;;  %v720_v56 = vpop.permute.xlu0 %719 }
 0x2a4   : > { %v722_v58 = vsel %vm721_vm15, %v718_v34, %v720_v56  ;;  %730 = vst.msk [vmem:[#allocation2 + $0x40] sm:$0xf0] %vm729_vm0, %v720_v56 }
 0x2a5   : > { %728 = vst [vmem:[#allocation2 + $0x38] sm:$0xf0] %v722_v58 }
 0x2a9   : > { %v747_v59 = vpop.permute.xlu1 %746 }
 0x2aa   : > { %v748_v60 = vsel %vm446_vm4, %v745_v39, %v747_v59  ;;  %756 = vst.msk [vmem:[#allocation2 + $0x58] sm:$0xf0] %vm755_vm1, %v747_v59 }
 0x2ab   : > { %754 = vst [vmem:[#allocation2 + $0x50] sm:$0xf0] %v748_v60  ;;  %v665_v61 = vpop.permute.xlu0 %664  ;;  %v776_v0 = vld [vmem:[#allocation2 + $0x40] sm:$0xff] }
 0x2ac   : > { %v666_v62 = vsel %vm337_vm2, %v663_v35, %v665_v61  ;;  %674 = vst.msk [vmem:[#allocation2 + $0x10] sm:$0xf0] %vm673_vm5, %v665_v61  ;;  %v775_v3 = vld [vmem:[#allocation2 + $0x38] sm:$0xff] }
 0x2ad   : > { %672 = vst [vmem:[#allocation2 + $0x8] sm:$0xf0] %v666_v62 }
 0x2b1   : > { %v692_v63 = vpop.permute.xlu1 %691  ;;  %v778_v1 = vld [vmem:[#allocation2 + $0x58] sm:$0xff] }
 0x2b2   : > { %702 = vst.msk [vmem:[#allocation2 + $0x28] sm:$0xf0] %vm701_vm6, %v692_v63  ;;  %v784_v2 = vpack.c.bf16 %v778_v1, %v776_v0  ;;  %v777_v4 = vld [vmem:[#allocation2 + $0x50] sm:$0xff] }
 0x2b3   : > { %v690_v5 = vpop.permute.xlu0 %689  ;;  %v783_v6 = vpack.c.bf16 %v777_v4, %v775_v3  ;;  %v772_v8 = vld [vmem:[#allocation2 + $0x10] sm:$0xff]  ;;  %v961_v3 = vld [vmem:[%s1675_s4] sm:$0xf] }
 0x2b4   : > { %v694_v7 = vsel %vm693_vm8, %v690_v5, %v692_v63  ;;  %824 = vmatpush.bf16.msra.mxu1 %v784_v2  ;;  %v771_v11 = vld [vmem:[#allocation2 + $0x8] sm:$0xff] }
 0x2b5   : > { %700 = vst [vmem:[#allocation2 + $0x20] sm:$0xf0] %v694_v7  ;;  %811 = vmatpush.bf16.msra.mxu3 %v783_v6 }
 0x2b9   : > { %v774_v9 = vld [vmem:[#allocation2 + $0x28] sm:$0xff] }
 0x2ba   : > { %v782_v10 = vpack.c.bf16 %v774_v9, %v772_v8 }
 0x2bc   : > { %825 = vmatpush.bf16.msra.mxu1 %v782_v10  ;;  %v773_v12 = vld [vmem:[#allocation2 + $0x20] sm:$0xff] }
 0x2bd   : > { %v781_v14 = vpack.c.bf16 %v773_v12, %v771_v11 }
 0x2bf   : > { %812 = vmatpush.bf16.msra.mxu3 %v781_v14  ;;  %1162 = vmatmul.msk.bf16.vlgmr.msra.gmra.mxu1 %vm794_vm9, %v787_v13 }
 0x2c2   : > { %1161 = vmatmul.msk.bf16.vlgmr.msra.gmra.mxu3 %vm794_vm9, %v787_v13 }
 0x33c   : > { %v827_v16 = vpop.f32.mrf.mxu1 }
 0x33d   : > { %v828_v17 = vadd.f32 %v827_v16, %v792_v15 }
 0x33f   : > { %v1573_v18 = vmax.f32 %v828_v17, 0.0 }
 0x341   : > { %911 = vrot.lane.b32.xlu2 %v1573_v18, %s1313_s18  ;;  %899 = vrot.lane.b32.xlu0 %v1573_v18, %s1308_s28 }
 0x342   : > { %923 = vrot.lane.b32.xlu1 %v1573_v18, %s1310_s13 }
 0x344   : > { %v829_v19 = vpop.f32.mrf.mxu1 }
 0x345   : > { %v814_v20 = vpop.f32.mrf.mxu3 }
 0x346   : > { %v815_v21 = vadd.f32 %v814_v20, %v792_v15 }
 0x348   : > { %v1581_v22 = vmax.f32 %v815_v21, 0.0 }
 0x349   : > { %851 = vrot.lane.b32.xlu2 %v1573_v18, %s1314_s19  ;;  %887 = vrot.lane.b32.xlu0 %v1573_v18, %s1312_s15 }
 0x34a   : > { %875 = vrot.lane.b32.xlu1 %v1573_v18, %s1311_s14 }
 0x34d   : > { %v816_v23 = vpop.f32.mrf.mxu3 }
 0x351   : > { %897 = vrot.lane.b32.xlu2 %v1581_v22, %s1308_s28  ;;  %921 = vrot.lane.b32.xlu0 %v1581_v22, %s1310_s13  ;;  %s1261_s28 = scalar_lea.hbm %s1677_s6, 32 }
 0x352   : > { %909 = vrot.lane.b32.xlu1 %v1581_v22, %s1313_s18 }
 0x359   : > { %885 = vrot.lane.b32.xlu2 %v1581_v22, %s1312_s15  ;;  %873 = vrot.lane.b32.xlu0 %v1581_v22, %s1311_s14  ;;  %s1186_s14 = sshll.u32 %s1373_s25, 4  ;;  %s1010_s25 = scalar_lea.sflag [#allocation5], %s245_s9 }
 0x35a   : > { %849 = vrot.lane.b32.xlu1 %v1581_v22, %s1314_s19  ;;  %s1021_s19 = scalar_lea.hbm %s1677_s6, %s1186_s14 }
 0x35b   : > { %s1025_s26 = sshll.u32 %s1021_s19, 4  ;;  %s1026_s26 = int_to_ptr.hbm [resolvable:$true] %s1025_s26 }
 0x35c   : > { %s1255_s29 = sshra.s32 %s1026_s26, 4  ;;  %s1256_s29 = int_to_ptr.hbm [resolvable:$true] %s1255_s29 }
 0x35d   : > { %s1257_s10 = scalar_lea.hbm %s1256_s29, 16  ;;  %p1262_p1 = scmp.lt.s32.totalorder %s1256_s29, %s1677_s6 }
 0x35e   : > { %p1258_p12 = scmp.ne.s32.totalorder %s1256_s29, %s1257_s10  ;;  %p1263_p2 = scmp.lt.s32.totalorder %s1261_s28, %s1257_s10 }
 0x360   : > { %p1259_p13 = pnand %p1258_p12, %p1390_p5  ;;  %p1264_p3 = por %p1263_p2, %p1262_p1 }
 0x361   : > { %837 = vrot.lane.b32.xlu2 %v1581_v22, %s1306_s17  ;;  %861 = vrot.lane.b32.xlu0 %v1581_v22, %s1315_s20 }
 0x362   : > { %863 = vrot.lane.b32.xlu1 %v1573_v18, %s1315_s20  ;;  %s1023_s20 = sshll.u32 %s1407_s16, 4  ;;  %p1260_p0 = pneg %p1259_p13  ;;  %s1024_s20 = int_to_ptr.vmem [resolvable:$true] %s1023_s20 }
 0x364   : > { %p1265_p4 = pnand %p1264_p3, %p1260_p0 }
 0x369   : > { %839 = vrot.lane.b32.xlu0 %v1573_v18, %s1306_s17 }
 0x36a   : > { %965 = vperm.xlu1 %1239, %v962_v50  }
 0x39b   : > { %v912_v24 = vpop.permute.xlu2 %911 }
 0x39c   : > { %920 = vst.msk [vmem:[#allocation3 + $0xb8] sm:$0xff] %vm446_vm4, %v912_v24 }
 0x3a3   : > { %v852_v25 = vpop.permute.xlu2 %851  ;;  %v948_v39 = vld [vmem:[#allocation3 + $0xb8] sm:$0xff] }
 0x3a4   : > { %860 = vst.msk [vmem:[#allocation3 + $0x40] sm:$0xff] %vm679_vm11, %v852_v25 }
 0x3ab   : > { %v898_v26 = vpop.permute.xlu2 %897  ;;  %v938_v63 = vld [vmem:[#allocation3 + $0x40] sm:$0xff] }
 0x3b3   : > { %v886_v27 = vpop.permute.xlu2 %885  ;;  %v900_v28 = vpop.permute.xlu0 %899 }
 0x3b4   : > { %v924_v29 = vpop.permute.xlu1 %923  ;;  %v901_v30 = vsel %vm345_vm3, %v898_v26, %v900_v28  ;;  %908 = vst.msk [vmem:[#allocation3 + $0xa0] sm:$0xff] %vm345_vm3, %v900_v28  ;;  %vm968_vm3 = vcmask 588800  }
 0x3b5   : > { %932 = vst.msk [vmem:[#allocation3 + $0xd0] sm:$0xff] %vm761_vm7, %v924_v29 }
 0x3bb   : > { %v838_v31 = vpop.permute.xlu2 %837  ;;  %v888_v32 = vpop.permute.xlu0 %887  ;;  %v946_v38 = vld [vmem:[#allocation3 + $0xa0] sm:$0xff] }
 0x3bc   : > { %v876_v33 = vpop.permute.xlu1 %875  ;;  %v889_v34 = vsel %vm721_vm15, %v886_v27, %v888_v32  ;;  %v950_v35 = vld [vmem:[#allocation3 + $0xd0] sm:$0xff]  ;;  %896 = vst.msk [vmem:[#allocation3 + $0x88] sm:$0xff] %vm721_vm15, %v888_v32  ;;  %v958_v40 = vpack.c.bf16 %v948_v39, %v946_v38 }
 0x3bd   : > { %884 = vst.msk [vmem:[#allocation3 + $0x70] sm:$0xff] %vm707_vm13, %v876_v33  ;;  %v960_v36 = vpack.c.bf16 %v950_v35, %v950_v35 }
 0x3bf   : > { %v977_v37 = vsel %vm972_vm10, %v960_v36, 0 }
 0x3c0   : > { %995 = vmatpush.bf16.msra.mxu0 %v977_v37 }
 0x3c3   : > { %v922_v41 = vpop.permute.xlu0 %921  ;;  %v944_v47 = vld [vmem:[#allocation3 + $0x88] sm:$0xff] }
 0x3c4   : > { %v910_v42 = vpop.permute.xlu1 %909  ;;  %996 = vmatpush.bf16.msra.mxu0 %v958_v40  ;;  %v925_v43 = vsel %vm761_vm7, %v922_v41, %v924_v29  ;;  %v942_v44 = vld [vmem:[#allocation3 + $0x70] sm:$0xff] }
 0x3c5   : > { %v913_v45 = vsel %vm446_vm4, %v910_v42, %v912_v24  ;;  %v959_v46 = vpack.c.bf16 %v925_v43, %v925_v43  ;;  %v956_v48 = vpack.c.bf16 %v944_v47, %v942_v44 }
 0x3c6   : > { %v957_v51 = vpack.c.bf16 %v913_v45, %v901_v30 }
 0x3c7   : > { %v974_v49 = vsel %vm972_vm10, %v959_v46, 0 }
 0x3c8   : > { %982 = vmatpush.bf16.msra.mxu2 %v974_v49  ;;  %997 = vmatpush.bf16.msra.mxu0 %v956_v48 }
 0x3cb   : > { %v874_v52 = vpop.permute.xlu0 %873 }
 0x3cc   : > { %v850_v53 = vpop.permute.xlu1 %849  ;;  %v877_v54 = vsel %vm707_vm13, %v874_v52, %v876_v33  ;;  %983 = vmatpush.bf16.msra.mxu2 %v957_v51 }
 0x3cd   : > { %v853_v55 = vsel %vm679_vm11, %v850_v53, %v852_v25  ;;  %v955_v56 = vpack.c.bf16 %v889_v34, %v877_v54 }
 0x3d0   : > { %984 = vmatpush.bf16.msra.mxu2 %v955_v56 }
 0x3d3   : > { %v862_v57 = vpop.permute.xlu0 %861 }
 0x3d4   : > { %v864_v58 = vpop.permute.xlu1 %863 }
 0x3d5   : > { %872 = vst.msk [vmem:[#allocation3 + $0x58] sm:$0xff] %vm693_vm8, %v864_v58  ;;  %v865_v59 = vsel %vm693_vm8, %v862_v57, %v864_v58 }
 0x3d6   : > { %v953_v60 = vpack.c.bf16 %v865_v59, %v853_v55 }
 0x3d8   : > { %985 = vmatpush.bf16.msra.mxu2 %v953_v60 }
 0x3db   : > { %v840_v61 = vpop.permute.xlu0 %839 }
 0x3dc   : > { %v841_v62 = vsel %vm337_vm2, %v838_v31, %v840_v61  ;;  %848 = vst.msk [vmem:[#allocation3 + $0x28] sm:$0xff] %vm337_vm2, %v840_v61  ;;  %v940_v0 = vld [vmem:[#allocation3 + $0x58] sm:$0xff]  ;;  %v966_v6 = vpop.permute.xlu1 %965 }
 0x3dd   : > { %v954_v1 = vpack.c.bf16 %v940_v0, %v938_v63  ;;  %v951_v2 = vpack.c.bf16 %v841_v62, %v1581_v22 }
 0x3df   : > { %998 = vmatpush.bf16.msra.mxu0 %v954_v1  ;;  %986 = vmatpush.bf16.msra.mxu2 %v951_v2 }
 0x3e2   : > { %1163 = vmatmul.msk.bf16.vlgmr.msra.gmra.mxu2 %vm968_vm3, %v961_v3 }
 0x3e3   : > { %v936_v4 = vld [vmem:[#allocation3 + $0x28] sm:$0xff] }
 0x3e4   : > { %v952_v5 = vpack.c.bf16 %v936_v4, %v1573_v18 }
 0x3e6   : > { %999 = vmatpush.bf16.msra.mxu0 %v952_v5 }
 0x3e9   : > { %1164 = vmatmul.msk.bf16.vlgmr.msra.gmra.mxu0 %vm968_vm3, %v961_v3 }
 0x465   : > { %v988_v7 = vpop.f32.mrf.mxu2 }
 0x466   : > { %v1001_v8 = vpop.f32.mrf.mxu0  ;;  %v989_v9 = vadd.f32 %v988_v7, %v966_v6 }
 0x467   : > { %v1002_v10 = vadd.f32 %v1001_v8, %v966_v6 }
 0x468   : > { %v1005_v11 = vmax.f32 %v989_v9, 0.0 }
 0x469   : > { %v1006_v12 = vmax.f32 %v1002_v10, 0.0 }
 0x46a   : > { %1007 = vst [vmem:[%s1407_s16] sm:$0xff] %v1005_v11 }
 0x46b   : > { %1008 = vst [vmem:[%s1407_s16 + $0x8] sm:$0xff] %v1006_v12 }
 0x46c   : > { %1268 = shalt.err (!%p1265_p4)
}
 0x46d   : > { %1187 = dma.vmem_to_hbm [thread:$0]  (%p1390_p5), %s1024_s20, 256, %s1026_s26, %s1010_s25   ;;  %v990_v13 = vpop.f32.mrf.mxu2 }
 0x46e   : > { %v1003_v14 = vpop.f32.mrf.mxu0 }
 0x46f PF: > { %p1193_p7 = scmp.ge.s32.totalorder %s1303_s24, 2  ;;  %s1037_s9 = sand.u32 1, %s1291_s21  }
 0x470   : > { %s1038_s16 = scalar_lea.sflag [#allocation5], %s1037_s9 }
 0x471   : > { %p1190_p8 = pnand %p1193_p7, %p1394_p6 }
 0x473   : > { %p1191_p9 = pneg %p1190_p8 }
 0x475   : > { %1286 = dma.done.wait (%p1191_p9), %s1038_s16, 256  }
 0x476   : > { %1288 = vsyncadd (%p1191_p9), %s1038_s16, 4294967040  ;;  %p16_p5 = scmp.ge.s32.totalorder %s1377_s27, 4   ;;  %s1680_s21 = smov %s1295_s22 }
 0x477   : > { %s1681_s22 = smov %s1299_s23  ;;  %s1682_s23 = smov %s1388_s30 }
 0x478   : > { %s1683_s24 = smov %s1377_s27  ;;  %18 = sbr.rel (!%p16_p5) target bundleno = 3 (0x3), region = 86 }
 0x47d   :  { %1044 = vsyncpa [#allocation5], 1 }
 0x47e   :  { %1046 = vsyncpa [#allocation5 + $0x1], 1 }

</bundles_post_ra>
